<compile_context>
chip_gen: v7x
topology: tpu7x:2x2x1
jax: 0.10.0
libtpu: 0.0.40
codegen_flags: <defaults>
</compile_context>

<pallas_src>
import jax
import jax.numpy as jnp
from jax import lax
from jax.experimental import pallas as pl
from jax.experimental.pallas import tpu as pltpu


# --------------------------------------------------------------------------- #
# Kernels
# --------------------------------------------------------------------------- #

def _mm_kernel_inplace(x_ref, b_ref, o_ref):
    """Matmul tile with f32 in-place accumulation: o[i,j] += x[i,k] @ beta[k,j]."""
    k = pl.program_id(2)

    @pl.when(k == 0)
    def _init():
        o_ref[...] = jnp.zeros_like(o_ref)

    o_ref[...] += jnp.dot(x_ref[...], b_ref[...],
                          preferred_element_type=jnp.float32)


def _mm_kernel_scratch(x_ref, b_ref, o_ref, acc_ref):
    """Matmul tile with f32 scratch accumulator (for non-f32 output dtypes)."""
    k = pl.program_id(2)

    @pl.when(k == 0)
    def _init():
        acc_ref[...] = jnp.zeros_like(acc_ref)

    acc_ref[...] += jnp.dot(x_ref[...], b_ref[...],
                            preferred_element_type=jnp.float32)

    @pl.when(k == pl.num_programs(2) - 1)
    def _finalize():
        o_ref[...] = acc_ref[...].astype(o_ref.dtype)


def _small_o_kernel(x_ref, bt_ref, ot_ref):
    """Small-O mat-vec tile with transposed (lane-dense) output.

    beta^T (O, tk) and x (tm, tk) are contracted on the shared tk (lane) axis,
    producing an (O, tm) tile whose last dim (batch) is 128-lane dense.  The
    output block is VMEM-resident across the k grid axis -> accumulate in place.
    """
    k = pl.program_id(1)

    @pl.when(k == 0)
    def _init():
        ot_ref[...] = jnp.zeros_like(ot_ref)

    ot_ref[...] += lax.dot_general(
        bt_ref[...], x_ref[...],
        dimension_numbers=(((1,), (1,)), ((), ())),
        preferred_element_type=jnp.float32)


# --------------------------------------------------------------------------- #
# Tiling helpers
# --------------------------------------------------------------------------- #

def _round_up(a, m):
    return ((a + m - 1) // m) * m


def _pick_tile(dim, target, align):
    """Pick a block size for `dim`.

    Prefers (a) the full dim when it already fits `target` (always a legal
    block shape, no padding), else (b) the largest `align`-multiple <= target
    that divides `dim` (no padding).  Only when no aligned divisor exists do we
    fall back to padding `dim` up to a tile multiple.  Returns (tile, padded).
    """
    if dim <= target:
        return dim, dim
    t = max(align, (target // align) * align)
    while t >= align:
        if dim % t == 0:
            return t, dim
        t -= align
    t = max(align, (target // align) * align)
    return t, _round_up(dim, t)


def _pad2(a, rows, cols):
    r, c = a.shape
    if (r, c) == (rows, cols):
        return a
    return jnp.pad(a, ((0, rows - r), (0, cols - c)))


def _tile_defaults():
    """Per-generation tile targets and scoped-VMEM limit.

    v5e / v6e have 128 MiB VMEM -> big blocks push this (memory-bound) kernel
    toward the HBM roofline.  v7x has 64 MiB per TensorCore -> keep the
    double-buffered footprint well under ~40 MiB and leave compiler headroom.
    """
    kind = ""
    try:
        kind = jax.devices()[0].device_kind.lower()
    except Exception:
        pass
    is_v7 = ("v7" in kind) or ("7x" in kind)
    if is_v7:
        return dict(tm=512, tn=512, tk=1024,
                    vmem_limit=40 * 1024 * 1024, two_core=True)
    return dict(tm=512, tn=1024, tk=1024,
                vmem_limit=48 * 1024 * 1024, two_core=False)


# --------------------------------------------------------------------------- #
# Forward paths
# --------------------------------------------------------------------------- #

def _forward_matmul(x, beta, out_dtype, tm, tn, tk, vmem_limit, two_core):
    """General path (O >= 128): 3-D tiled MXU matmul out = x @ beta."""
    B, D = x.shape
    O = beta.shape[1]
    sub_align = 8 if x.dtype.itemsize >= 4 else 16   # bf16 min sublane tile

    tm, Bp = _pick_tile(B, tm, sub_align)
    tn, Op = _pick_tile(O, tn, 128)
    tk, Dp = _pick_tile(D, tk, 128)

    # v7x has two TensorCores: if the parallel (i, j) grid degenerated to a
    # single block, split the batch axis (only when that needs no padding).
    if (two_core and (Bp // tm) * (Op // tn) == 1 and Bp == B
            and B % (2 * sub_align) == 0):
        tm = B // 2

    x_p = _pad2(x, Bp, Dp)
    beta_p = _pad2(beta, Dp, Op)

    grid = (Bp // tm, Op // tn, Dp // tk)
    acc_in_out = jnp.dtype(out_dtype) == jnp.dtype(jnp.float32)

    if acc_in_out:
        kernel = _mm_kernel_inplace     # accumulate directly in o_ref (f32)
        scratch = []
    else:
        kernel = _mm_kernel_scratch     # f32 scratch, cast on the last k step
        scratch = [pltpu.VMEM((tm, tn), jnp.float32)]

    out = pl.pallas_call(
        kernel,
        out_shape=jax.ShapeDtypeStruct((Bp, Op), out_dtype),
        grid_spec=pltpu.PrefetchScalarGridSpec(
            num_scalar_prefetch=0,
            grid=grid,
            in_specs=[
                pl.BlockSpec((tm, tk), lambda i, j, k: (i, k)),   # x
                pl.BlockSpec((tk, tn), lambda i, j, k: (k, j)),   # beta
            ],
            out_specs=pl.BlockSpec((tm, tn), lambda i, j, k: (i, j)),
            scratch_shapes=scratch,
        ),
        compiler_params=pltpu.CompilerParams(
            dimension_semantics=("parallel", "parallel", "arbitrary"),
            vmem_limit_bytes=vmem_limit,
        ),
    )(x_p, beta_p)

    if (Bp, Op) != (B, O):
        out = out[:B, :O]
    return out


def _forward_small_o(x, beta, out_dtype, tm, tk, vmem_limit, two_core):
    """Small-O path (module default outp_dim=1): lane-dense transposed output."""
    B, D = x.shape
    O = beta.shape[1]
    beta_t = beta.T                        # (O, D): tiny, transpose is negligible

    tm, Bp = _pick_tile(B, tm, 128)        # tm is the output lane dim
    tk, Dp = _pick_tile(D, tk, 128)

    # v7x: give both TensorCores a batch block when possible without padding.
    if two_core and Bp // tm == 1 and Bp == B and B % 256 == 0:
        tm = B // 2

    x_p = _pad2(x, Bp, Dp)
    bt_p = _pad2(beta_t, O, Dp)

    grid = (Bp // tm, Dp // tk)

    out_t = pl.pallas_call(
        _small_o_kernel,
        out_shape=jax.ShapeDtypeStruct((O, Bp), jnp.float32),
        grid_spec=pltpu.PrefetchScalarGridSpec(
            num_scalar_prefetch=0,
            grid=grid,
            in_specs=[
                pl.BlockSpec((tm, tk), lambda i, k: (i, k)),      # x
                pl.BlockSpec((O, tk), lambda i, k: (0, k)),       # beta^T
            ],
            out_specs=pl.BlockSpec((O, tm), lambda i, k: (0, i)),
        ),
        compiler_params=pltpu.CompilerParams(
            dimension_semantics=("parallel", "arbitrary"),
            vmem_limit_bytes=vmem_limit,
        ),
    )(x_p, bt_p)

    out = out_t.T                          # (Bp, O): tiny slab, cheap transpose
    if Bp != B:
        out = out[:B]
    return out.astype(out_dtype)


def mtdiagonal_net_forward(x, w_pos, v_pos, v_neg, w_neg, *,
                           compute_dtype=None,
                           tm=None, tn=None, tk=None,
                           vmem_limit_bytes=None,
                           small_o_threshold=128):
    """Forward pass of MTDiagonalNet: x @ (w_pos * v_pos - w_neg * v_neg)."""
    B, D = x.shape
    O = v_pos.shape[1]
    assert w_pos.shape == (D, 1) and w_neg.shape == (D, 1)
    assert v_pos.shape == (D, O) and v_neg.shape == (D, O)
    out_dtype = x.dtype

    # beta depends only on the parameters: compute it ONCE here as a fused XLA
    # elementwise op (D*O bytes of traffic) instead of per (i,k) tile on the VPU.
    f32 = jnp.float32
    beta = (w_pos.astype(f32) * v_pos.astype(f32)
            - w_neg.astype(f32) * v_neg.astype(f32))

    # Optional reduced-precision MXU operands (f32 accumulation is kept in the
    # kernel).  bf16 halves x/beta HBM traffic and runs the MXU at native rate.
    if compute_dtype is None:
        compute_dtype = x.dtype
    x_c = x.astype(compute_dtype)
    beta_c = beta.astype(compute_dtype)

    defaults = _tile_defaults()
    tm = defaults["tm"] if tm is None else tm
    tn = defaults["tn"] if tn is None else tn
    tk = defaults["tk"] if tk is None else tk
    vmem_limit = (defaults["vmem_limit"] if vmem_limit_bytes is None
                  else vmem_limit_bytes)
    two_core = defaults["two_core"]

    if O < small_o_threshold:
        return _forward_small_o(x_c, beta_c, out_dtype, tm, tk,
                                vmem_limit, two_core)
    return _forward_matmul(x_c, beta_c, out_dtype, tm, tn, tk,
                           vmem_limit, two_core)


# --------------------------------------------------------------------------- #
# Reference + parameter init (matches MTDiagonalNet.__init__)
# --------------------------------------------------------------------------- #

def init_params(inp_dim, outp_dim=1, scaling=1.0, dtype=jnp.float32):
    w_pos = scaling * jnp.ones((inp_dim, 1), dtype=dtype)
    v_pos = scaling * jnp.ones((inp_dim, outp_dim), dtype=dtype)
    v_neg = scaling * jnp.ones((inp_dim, outp_dim), dtype=dtype)
    w_neg = scaling * jnp.ones((inp_dim, 1), dtype=dtype)
    return w_pos, v_pos, v_neg, w_neg


def _reference(x, w_pos, v_pos, v_neg, w_neg):
    beta = w_pos * v_pos - w_neg * v_neg
    return jnp.dot(x, beta, precision=lax.Precision.HIGHEST)


if __name__ == "__main__":
    key = jax.random.PRNGKey(0)
    k1, k2, k3, k4, k5, k6, k7 = jax.random.split(key, 7)

    # --- Case 1: module-default small shapes (O=1, lane-dense small-O path),
    # default all-ones init -> beta == 0. -----------------------------------
    batch, inp_dim, outp_dim, scaling = 8, 32, 1, 0.5
    x = jax.random.normal(k1, (batch, inp_dim), dtype=jnp.float32)
    w_pos, v_pos, v_neg, w_neg = init_params(inp_dim, outp_dim, scaling)
    out = jax.block_until_ready(
        mtdiagonal_net_forward(x, w_pos, v_pos, v_neg, w_neg))
    ref = _reference(x, w_pos, v_pos, v_neg, w_neg)
    assert out.shape == (batch, outp_dim) and out.dtype == x.dtype
    assert jnp.allclose(out, ref, atol=1e-5, rtol=1e-5)

    # --- Case 2: same shapes, random params (non-trivial small-O check). ---
    w_pos_r = jax.random.normal(k2, (inp_dim, 1), dtype=jnp.float32)
    w_neg_r = jax.random.normal(k3, (inp_dim, 1), dtype=jnp.float32)
    v_pos_r = jax.random.normal(k4, (inp_dim, outp_dim), dtype=jnp.float32)
    v_neg_r = jax.random.normal(k5, (inp_dim, outp_dim), dtype=jnp.float32)
    out_r = jax.block_until_ready(
        mtdiagonal_net_forward(x, w_pos_r, v_pos_r, v_neg_r, w_neg_r))
    ref_r = _reference(x, w_pos_r, v_pos_r, v_neg_r, w_neg_r)
    assert jnp.allclose(out_r, ref_r, atol=1e-3, rtol=1e-3)

    # --- Case 3: small-O path with a tiled (i, k) grid = (2, 2). -----------
    B3, D3, O3 = 256, 256, 4
    kx3, kp3 = jax.random.split(k6)
    ka, kb, kc, kd = jax.random.split(kp3, 4)
    x3 = jax.random.normal(kx3, (B3, D3), dtype=jnp.float32)
    p3 = (jax.random.normal(ka, (D3, 1), dtype=jnp.float32),   # w_pos
          jax.random.normal(kb, (D3, O3), dtype=jnp.float32),  # v_pos
          jax.random.normal(kc, (D3, O3), dtype=jnp.float32),  # v_neg
          jax.random.normal(kd, (D3, 1), dtype=jnp.float32))   # w_neg
    out3 = jax.block_until_ready(
        mtdiagonal_net_forward(x3, *p3, tm=128, tk=128))
    ref3 = _reference(x3, *p3)
    assert out3.shape == (B3, O3)
    assert jnp.allclose(out3, ref3, atol=1e-2, rtol=1e-3)

    # --- Case 4: large-O tiled matmul path, grid = (2, 2, 2), f32 in-place
    # accumulation (no scratch). ---------------------------------------------
    B4, D4, O4 = 256, 512, 256
    kx4, kp4 = jax.random.split(k7)
    ka, kb, kc, kd = jax.random.split(kp4, 4)
    x4 = jax.random.normal(kx4, (B4, D4), dtype=jnp.float32)
    p4 = (jax.random.normal(ka, (D4, 1), dtype=jnp.float32),   # w_pos
          jax.random.normal(kb, (D4, O4), dtype=jnp.float32),  # v_pos
          jax.random.normal(kc, (D4, O4), dtype=jnp.float32),  # v_neg
          jax.random.normal(kd, (D4, 1), dtype=jnp.float32))   # w_neg
    out4 = jax.block_until_ready(
        mtdiagonal_net_forward(x4, *p4, tm=128, tn=128, tk=256))
    ref4 = _reference(x4, *p4)
    assert out4.shape == (B4, O4)
    assert jnp.allclose(out4, ref4, atol=1e-2, rtol=1e-3)

    # --- Case 5: bf16 MXU operands + f32 accumulation (v5e/v6e/v7x perf
    # path), checked against an f32 reference on bf16-rounded inputs. --------
    out5 = jax.block_until_ready(
        mtdiagonal_net_forward(x4, *p4, compute_dtype=jnp.bfloat16,
                               tm=128, tn=128, tk=256))
    w_pos4, v_pos4, v_neg4, w_neg4 = p4
    beta4 = w_pos4 * v_pos4 - w_neg4 * v_neg4
    ref5 = jnp.dot(x4.astype(jnp.bfloat16).astype(jnp.float32),
                   beta4.astype(jnp.bfloat16).astype(jnp.float32),
                   precision=lax.Precision.HIGHEST)
    assert out5.shape == (B4, O4) and out5.dtype == x4.dtype
    assert jnp.allclose(out5, ref5, atol=1e-2, rtol=1e-2)

    print("KERNEL_OK")
</pallas_src>

<mosaic_0001>
module attributes {stable_mosaic.version = 11 : i64} {
  func.func @_small_o_kernel(%arg0: i32, %arg1: i32, %arg2: memref<8x32xf32, #tpu.memory_space<vmem>>, %arg3: memref<1x32xf32, #tpu.memory_space<vmem>>, %arg4: memref<1x8xf32, #tpu.memory_space<vmem>>) attributes {dimension_semantics = [#tpu.dimension_semantics<parallel>, #tpu.dimension_semantics<arbitrary>], iteration_bounds = array<i64: 1, 1>, scalar_prefetch = 0 : i64, scratch_operands = 0 : i64, tpu.core_type = #tpu.core_type<tc>, window_params = [{transform_indices = @transform_0, window_bounds = array<i64: 8, 32>}, {transform_indices = @transform_1, window_bounds = array<i64: 1, 32>}, {transform_indices = @transform_2, window_bounds = array<i64: 1, 8>}]} {
    %c0_i32 = arith.constant 0 : i32
    %0 = arith.cmpi eq, %arg1, %c0_i32 : i32
    %1 = arith.extui %0 : i1 to i32
    %c0_i32_0 = arith.constant 0 : i32
    %2 = arith.cmpi ne, %1, %c0_i32_0 : i32
    scf.if %2 {
      %cst_8 = arith.constant 0.000000e+00 : f32
      %9 = vector.broadcast %cst_8 : f32 to vector<1x8xf32>
      %c0_9 = arith.constant 0 : index
      %c0_10 = arith.constant 0 : index
      %10 = vector.load %arg4[%c0_9, %c0_10] : memref<1x8xf32, #tpu.memory_space<vmem>>, vector<1x8xf32>
      tpu.vector_store %arg4[%c0_9, %c0_10], %9 {strides = array<i32>} : memref<1x8xf32, #tpu.memory_space<vmem>>, vector<1x8xf32>,
    } else {
    }
    %c0 = arith.constant 0 : index
    %c0_1 = arith.constant 0 : index
    %3 = vector.load %arg4[%c0, %c0_1] : memref<1x8xf32, #tpu.memory_space<vmem>>, vector<1x8xf32>
    %c0_2 = arith.constant 0 : index
    %c0_3 = arith.constant 0 : index
    %4 = vector.load %arg3[%c0_2, %c0_3] : memref<1x32xf32, #tpu.memory_space<vmem>>, vector<1x32xf32>
    %c0_4 = arith.constant 0 : index
    %c0_5 = arith.constant 0 : index
    %5 = vector.load %arg2[%c0_4, %c0_5] : memref<8x32xf32, #tpu.memory_space<vmem>>, vector<8x32xf32>
    %cst = arith.constant dense<0.000000e+00> : vector<1x8xf32>
    %6 = tpu.matmul %4, %5, %cst {dimension_numbers = #tpu.dot_dimension_numbers<[1], [1], [0], [0], [0, 0, 1, 0], [], []>} : vector<1x32xf32>, vector<8x32xf32>, vector<1x8xf32> -> vector<1x8xf32>
    %7 = arith.addf %3, %6 : vector<1x8xf32>
    %c0_6 = arith.constant 0 : index
    %c0_7 = arith.constant 0 : index
    %8 = vector.load %arg4[%c0_6, %c0_7] : memref<1x8xf32, #tpu.memory_space<vmem>>, vector<1x8xf32>
    tpu.vector_store %arg4[%c0_6, %c0_7], %7 {strides = array<i32>} : memref<1x8xf32, #tpu.memory_space<vmem>>, vector<1x8xf32>,
    return
  }
  func.func @transform_0(%arg0: i32, %arg1: i32) -> (i32, i32) {
    %c0_i32 = arith.constant 0 : i32
    return %arg0, %arg1 : i32, i32
  }
  func.func @transform_1(%arg0: i32, %arg1: i32) -> (i32, i32) {
    %c0_i32 = arith.constant 0 : i32
    %c0_i32_0 = arith.constant 0 : i32
    return %c0_i32, %arg1 : i32, i32
  }
  func.func @transform_2(%arg0: i32, %arg1: i32) -> (i32, i32) {
    %c0_i32 = arith.constant 0 : i32
    %c0_i32_0 = arith.constant 0 : i32
    return %c0_i32, %arg0 : i32, i32
  }
}

</mosaic_0001>

<bundles_post_ra>
// kernel: tpu_custom_call.1
= control target key start
LH: loop header
LB: loop body
LE: loop exit
PB: predicated region body
PF: predicated region fallthrough
CT: control target
= control target key end

     0   :  { %7 = vsyncpa [#allocation3], 0  ;;  %s237_s0 = inlined_call_operand.hbm [shape: f32[8,32], index: 0, kind: input, shape index: {}]   ;;  %s238_s1 = inlined_call_operand.vmem [shape: f32[1,32], index: 1, kind: input, shape index: {}]   ;;  %s239_s2 = inlined_call_operand.hbm [shape: f32[1,8], index: 2, kind: output, shape index: {}]  }
   0x1   :  { %8 = vsyncpa [#allocation4], 0  ;;  %s189_s9 = smov [#allocation2]   ;;  %s141_s13 = scalar_lea.hbm %s237_s0, 128 }
   0x2   :  { %s15_s10 = sshll.u32 %s189_s9, 4  ;;  %p142_p0 = scmp.ne.s32.totalorder %s237_s0, %s141_s13  ;;  %s16_s10 = int_to_ptr.vmem [resolvable:$true] %s15_s10 }
   0x3   :  { %p145_p1 = scmp.lt.u32.totalorder %s141_s13, %s237_s0 }
   0x5   :  { %p147_p2 = pnand %p145_p1, %p142_p0 }
   0x7   :  { %150 = shalt.err (!%p147_p2)
}
   0x8   :  { %s151_s18 = scalar_lea.vmem %s16_s10, 128  ;;  %p156_p4 = scmp.lt.s32.totalorder %s16_s10, %s16_s10 }
   0x9   :  { %p152_p3 = scmp.ne.s32.totalorder %s16_s10, %s151_s18  ;;  %p157_p5 = scmp.lt.s32.totalorder %s151_s18, %s151_s18 }
   0xb   :  { %p158_p6 = por %p157_p5, %p156_p4 }
   0xd   :  { %p159_p7 = pnand %p158_p6, %p152_p3 }
   0xf   :  { %162 = shalt.err (!%p159_p7)
}
  0x10   :  { %18 = dma.hbm_to_vmem [thread:$0]  %s237_s0, 128, %s16_s10, [#allocation3]  }
  0x11   :  { %185 = dma.done.wait [#allocation3], 128  }
  0x12   :  { %186 = vsyncadd [#allocation3], 4294967168  ;;  %vm28_vm0 = vcmask 57344   ;;  %v190_v0 = vmov 0.0   ;;  %vm191_vm1 = vmmov 0   ;;  %vm33_vm2 = vcmask 261120  }
  0x13   :  { %29 = vst.msk [vmem:[#allocation5] sm:$0x1] %vm28_vm0, %v190_v0  ;;  %132 = vmatprep.subr.mxu0 %v190_v0  ;;  %134 = vmatprep.mubr.msk.f32.mxu0 %vm191_vm1, %v190_v0  ;;  %v32_v1 = vld [vmem:[#allocation2] sm:$0xff]  ;;  %s192_s23 = smov [#allocation5]  }
  0x14   :  { %133 = vmatpush3.xpose.msk.msra.mxu0 %vm33_vm2, %v32_v1  ;;  %v31_v2 = vld [vmem:[%s238_s1] sm:$0x1]  ;;  %s119_s0 = sshll.u32 %s192_s23, 4  ;;  %s120_s0 = int_to_ptr.vmem [resolvable:$true] %s119_s0 }
  0x15   :  { %s163_s24 = scalar_lea.vmem %s120_s0, 16  ;;  %s167_s25 = scalar_lea.vmem %s120_s0, 32 }
  0x16   :  { %p164_p8 = scmp.ne.s32.totalorder %s120_s0, %s163_s24  ;;  %p168_p9 = scmp.lt.s32.totalorder %s120_s0, %s120_s0 }
  0x17   :  { %135 = vmatmul.mubr.msk.f32.vlgmr.msra.gmra.mrb[0].mxu0 %vm33_vm2, %v31_v2  ;;  %p169_p10 = scmp.lt.s32.totalorder %s167_s25, %s163_s24 }
  0x19   :  { %p170_p11 = por %p169_p10, %p168_p9 }
  0x1a   :  { %v30_v3 = vld [vmem:[#allocation5] sm:$0x1] }
  0x1b   :  { %p171_p12 = pnand %p170_p11, %p164_p8 }
  0xea   :  { %v106_v4 = vpop.f32.mrb[0].mxu0 }
  0xeb   :  { %v110_v5 = vadd.f32 %v106_v4, %v30_v3  ;;  %v136_v6 = vpop.f32.mrb[1].mxu0 }
  0xed   :  { %112 = vst.msk [vmem:[#allocation5] sm:$0x1] %vm28_vm0, %v110_v5 }
  0xee   :  { %174 = shalt.err (!%p171_p12)
}
  0xef   :  { %s175_s27 = scalar_lea.hbm %s239_s2, 16 }
  0xf0   :  { %p176_p13 = scmp.ne.s32.totalorder %s239_s2, %s175_s27  ;;  %p179_p0 = scmp.lt.u32.totalorder %s175_s27, %s239_s2 }
  0xf2   :  { %p181_p1 = pnand %p179_p0, %p176_p13 }
  0xf4   :  { %184 = shalt.err (!%p181_p1)
}
  0xf5   :  { %122 = dma.vmem_to_hbm [thread:$0]  %s120_s0, 16, %s239_s2, [#allocation4]  }
  0xf6   :  { %187 = dma.done.wait [#allocation4], 16  }
  0xf7   :  { %188 = vsyncadd [#allocation4], 4294967280 }
  0xf8   :  { %126 = vsyncpa [#allocation3], 1 }
  0xf9   :  { %127 = vsyncpa [#allocation4], 1 }

</bundles_post_ra>
